<compile_context>
chip_gen: v7x
topology: tpu7x:2x2x1
jax: 0.10.0
libtpu: 0.0.40
codegen_flags: <defaults>
</compile_context>

<pallas_src>
import functools

import jax
import jax.numpy as jnp
from jax.experimental import pallas as pl
from jax.experimental.pallas import tpu as pltpu

LANE = 128


def _round_up(n, m):
    return ((n + m - 1) // m) * m


def _cdiv(a, b):
    return -(-a // b)


def _pad2(a, rows, cols):
    pr, pc = rows - a.shape[0], cols - a.shape[1]
    return jnp.pad(a, ((0, pr), (0, pc))) if (pr or pc) else a


def _vmem_budget_bytes():
    """Usable VMEM budget for this generation (physical capacity minus headroom)."""
    try:
        cap = int(pltpu.get_tpu_info().vmem_capacity_bytes)
    except Exception:
        cap = 64 << 20  # conservative (v7x-sized) fallback
    return max(cap - (8 << 20), 24 << 20)


@functools.lru_cache(maxsize=None)
def _single_buffer_supported():
    """Lowering-time (no execution) probe for pipeline_mode=pl.Buffered(1)."""
    if not hasattr(pl, "Buffered"):
        return False

    def k(x_ref, o_ref):
        o_ref[...] = x_ref[...]

    try:
        f = pl.pallas_call(
            k,
            out_shape=jax.ShapeDtypeStruct((8, 128), jnp.float32),
            grid=(1,),
            in_specs=[pl.BlockSpec((8, 128), lambda i: (0, 0),
                                   pipeline_mode=pl.Buffered(1))],
            out_specs=pl.BlockSpec((8, 128), lambda i: (0, 0)),
        )
        jax.jit(f).lower(jax.ShapeDtypeStruct((8, 128), jnp.float32))
        return True
    except Exception:
        return False


def mlp2_kernel(x_ref, w1_ref, b1_ref, w2_ref, b2_ref, o_ref, h_ref):
    # Grid = (batch_tiles, out_tiles). The hidden activation is computed once per
    # batch tile (j == 0) into the VMEM scratch and reused for every output tile.
    @pl.when(pl.program_id(1) == 0)
    def _():
        h = jnp.dot(x_ref[...], w1_ref[...], preferred_element_type=jnp.float32)
        h_ref[...] = jnp.maximum(h + b1_ref[...], 0.0).astype(h_ref.dtype)

    y = jnp.dot(h_ref[...], w2_ref[...], preferred_element_type=jnp.float32)
    o_ref[...] = jnp.maximum(y + b2_ref[...], 0.0).astype(o_ref.dtype)


def prepare_mlp2_params(w1, b1, w2, b2, *, compute_dtype=None):
    """One-time (cacheable) weight prep: pad feature dims to 128 lanes + cast.

    compute_dtype: dtype for the matmul operands (e.g. jnp.bfloat16 recommended on
    v6e/v7x); accumulation is always f32 and biases stay f32.
    """
    if b1.ndim == 1:
        b1 = b1.reshape(1, -1)
    if b2.ndim == 1:
        b2 = b2.reshape(1, -1)
    int_dim, hidden_dim = w1.shape
    assert w2.shape[0] == hidden_dim
    out_dim = w2.shape[1]
    cdtype = jnp.dtype(compute_dtype) if compute_dtype is not None else jnp.dtype(w1.dtype)

    H = _round_up(hidden_dim, LANE)
    N = _round_up(out_dim, LANE)
    return dict(
        w1=_pad2(w1.astype(cdtype), int_dim, H),
        b1=_pad2(b1.astype(jnp.float32), 1, H),
        w2=_pad2(w2.astype(cdtype), H, N),
        b2=_pad2(b2.astype(jnp.float32), 1, N),
        int_dim=int_dim, hidden_dim=hidden_dim, out_dim=out_dim,
        H=H, N=N, cdtype=cdtype,
    )


def mlp2_apply(params, x, *, batch_tile=None, out_tile=None, out_dtype=None):
    """relu(relu(x @ w1 + b1) @ w2 + b2) via one fused pallas_call (hot path)."""
    B, K = x.shape
    assert K == params["int_dim"], "x feature dim mismatch"
    H, N, out_dim = params["H"], params["N"], params["out_dim"]
    cdtype = params["cdtype"]
    out_dtype = jnp.dtype(out_dtype) if out_dtype is not None else x.dtype
    c = cdtype.itemsize
    o = jnp.dtype(out_dtype).itemsize
    sub = max(8, 32 // c)  # sublane packing: 8 f32, 16 bf16, 32 int8/fp8

    if x.dtype != cdtype:
        x = x.astype(cdtype)

    budget = _vmem_budget_bytes()
    resident_ok = _single_buffer_supported()
    w1_bufs = 1 if resident_ok else 2

    # Resident w1 (+ b1) footprint.
    w1_bytes = w1_bufs * (K * H * c + H * 4)
    if w1_bytes > int(budget * 0.75):
        # TODO(synk): K-tiled streaming-w1 path (f32 accumulator + pl.when init/finalize).
        raise NotImplementedError("w1 alone exceeds the VMEM budget; K-tiling not implemented")

    def io_bytes(tb, tn):
        # double-buffered x/out tiles + hidden scratch + f32 epilogue temporaries
        return tb * (2 * K * c + 2 * tn * o + H * c + H * 4 + tn * 4)

    # Keep w2 fully resident if it fits; otherwise stream it in (H, tn) column tiles.
    w2_full = w1_bufs * (H * N * c + N * 4)
    if out_tile is not None:
        tn = min(_round_up(out_tile, LANE), N)
    elif w1_bytes + w2_full + io_bytes(sub, N) <= budget:
        tn = N
    else:
        tn = N
        while tn > LANE and (w1_bytes + 2 * (H * tn * c + tn * 4)
                             + io_bytes(sub, tn) > budget):
            tn -= LANE
    nj = _cdiv(N, tn)
    w2_res = (nj == 1) and resident_ok
    w2_bytes = (1 if w2_res else 2) * (H * tn * c + tn * 4)

    # Batch tile: as large as the remaining VMEM budget allows (amortize per-step
    # overhead), rounded to the dtype sublane packing, but split so the batch grid
    # has >=2 tiles (v7x dual-TensorCore sharding + pipeline overlap).
    if batch_tile is None:
        batch_tile = 512 if c >= 4 else 1024
    per_row = 2 * K * c + 2 * tn * o + H * c + H * 4 + tn * 4
    avail = budget - w1_bytes - w2_bytes
    tb_cap = max(sub, (avail // per_row) // sub * sub)
    tb = min(_round_up(min(batch_tile, max(B, 1)), sub), tb_cap)
    ni = _cdiv(B, tb)
    if ni == 1 and B >= max(2 * sub, 128):
        tb = _round_up(_cdiv(B, 2), sub)
        ni = _cdiv(B, tb)

    vmem_est = w1_bytes + w2_bytes + tb * per_row
    vmem_limit = int(min(budget, max(vmem_est + (vmem_est >> 1), 32 << 20)))

    cost = pl.CostEstimate(
        flops=2 * B * (K * H + H * N),
        transcendentals=0,
        bytes_accessed=(B * K * c + K * H * c + H * N * c + (H + N) * 4 + B * N * o),
    )

    resident_kw = {"pipeline_mode": pl.Buffered(1)} if resident_ok else {}
    w2_kw = dict(resident_kw) if w2_res else {}

    out = pl.pallas_call(
        mlp2_kernel,
        out_shape=jax.ShapeDtypeStruct((B, N), out_dtype),
        grid=(ni, nj),
        in_specs=[
            pl.BlockSpec((tb, K), lambda i, j: (i, 0)),                # x tile (pipelined)
            pl.BlockSpec((K, H), lambda i, j: (0, 0), **resident_kw),  # w1 (resident)
            pl.BlockSpec((1, H), lambda i, j: (0, 0), **resident_kw),  # b1
            pl.BlockSpec((H, tn), lambda i, j: (0, j), **w2_kw),       # w2 (resident/streamed)
            pl.BlockSpec((1, tn), lambda i, j: (0, j), **w2_kw),       # b2
        ],
        out_specs=pl.BlockSpec((tb, tn), lambda i, j: (i, j)),         # lane-dense output
        scratch_shapes=[pltpu.VMEM((tb, H), cdtype)],                  # hidden act stays in VMEM
        compiler_params=pltpu.CompilerParams(
            dimension_semantics=("parallel", "arbitrary"),
            vmem_limit_bytes=vmem_limit),
        cost_estimate=cost,
    )(x, params["w1"], params["b1"], params["w2"], params["b2"])

    return out[:, :out_dim] if N != out_dim else out


def mlp2_forward(x, w1, b1, w2, b2, *, compute_dtype=None, batch_tile=None, out_tile=None):
    """Convenience one-shot wrapper (prep + apply). Prefer prepare + apply for reuse."""
    params = prepare_mlp2_params(w1, b1, w2, b2, compute_dtype=compute_dtype)
    return mlp2_apply(params, x, batch_tile=batch_tile, out_tile=out_tile)


def mlp2_reference(x, w1, b1, w2, b2):
    h = jnp.maximum(x @ w1 + b1, 0.0)
    return jnp.maximum(h @ w2 + b2, 0.0)


if __name__ == "__main__":
    # Small, deliberately unaligned shapes (MLP2(int_dim, hidden_dim, out_dim)) to
    # exercise padding, a multi-step batch grid, and partial (masked) tail tiles.
    B, int_dim, hidden_dim, out_dim = 300, 48, 96, 24

    key = jax.random.PRNGKey(0)
    kx, k1, k2, k3, k4 = jax.random.split(key, 5)

    lim1 = 1.0 / (int_dim ** 0.5)
    lim2 = 1.0 / (hidden_dim ** 0.5)
    x = jax.random.normal(kx, (B, int_dim), dtype=jnp.float32)
    w1 = jax.random.uniform(k1, (int_dim, hidden_dim), jnp.float32, -lim1, lim1)
    b1 = jax.random.uniform(k2, (hidden_dim,), jnp.float32, -lim1, lim1)
    w2 = jax.random.uniform(k3, (hidden_dim, out_dim), jnp.float32, -lim2, lim2)
    b2 = jax.random.uniform(k4, (out_dim,), jnp.float32, -lim2, lim2)

    ref = mlp2_reference(x, w1, b1, w2, b2)

    # f32 compute path: prepare once (cached padding/cast), cheap apply.
    params_f32 = prepare_mlp2_params(w1, b1, w2, b2)
    out = jax.block_until_ready(mlp2_apply(params_f32, x, batch_tile=128))
    assert out.shape == (B, out_dim)
    assert jnp.allclose(out, ref, atol=1e-5, rtol=1e-5), "f32 mismatch vs reference"

    # bf16 compute path (MXU-native dtype; f32 accumulation; looser tolerance).
    params_bf16 = prepare_mlp2_params(w1, b1, w2, b2, compute_dtype=jnp.bfloat16)
    out_bf16 = jax.block_until_ready(mlp2_apply(params_bf16, x))
    assert out_bf16.shape == (B, out_dim)
    assert jnp.allclose(out_bf16, ref, atol=5e-2, rtol=5e-2), "bf16 mismatch vs reference"

    # Streamed-w2 (N-tiled) fallback path, exercised via a wider output + forced tile.
    out_dim2 = 200
    w2b = jax.random.uniform(k3, (hidden_dim, out_dim2), jnp.float32, -lim2, lim2)
    b2b = jax.random.uniform(k4, (out_dim2,), jnp.float32, -lim2, lim2)
    ref2 = mlp2_reference(x, w1, b1, w2b, b2b)
    params2 = prepare_mlp2_params(w1, b1, w2b, b2b)
    out2 = jax.block_until_ready(mlp2_apply(params2, x, batch_tile=128, out_tile=128))
    assert out2.shape == (B, out_dim2)
    assert jnp.allclose(out2, ref2, atol=1e-5, rtol=1e-5), "streamed-w2 mismatch vs reference"

    print("KERNEL_OK")
</pallas_src>

<mosaic_0001>
module attributes {stable_mosaic.version = 11 : i64} {
  func.func @mlp2_kernel(%arg0: i32, %arg1: i32, %arg2: memref<128x48xf32, #tpu.memory_space<vmem>>, %arg3: memref<48x128xf32, #tpu.memory_space<vmem>>, %arg4: memref<1x128xf32, #tpu.memory_space<vmem>>, %arg5: memref<128x128xf32, #tpu.memory_space<vmem>>, %arg6: memref<1x128xf32, #tpu.memory_space<vmem>>, %arg7: memref<128x128xf32, #tpu.memory_space<vmem>>, %arg8: memref<128x128xf32, #tpu.memory_space<vmem>>) attributes {dimension_semantics = [#tpu.dimension_semantics<parallel>, #tpu.dimension_semantics<arbitrary>], iteration_bounds = array<i64: 3, 1>, scalar_prefetch = 0 : i64, scratch_operands = 1 : i64, tpu.core_type = #tpu.core_type<tc>, window_params = [{transform_indices = @transform_0, window_bounds = array<i64: 128, 48>}, {pipeline_mode = #tpu.pipeline_mode<synchronous>, transform_indices = @transform_1, window_bounds = array<i64: 48, 128>}, {pipeline_mode = #tpu.pipeline_mode<synchronous>, transform_indices = @transform_2, window_bounds = array<i64: 1, 128>}, {transform_indices = @transform_3, window_bounds = array<i64: 128, 128>}, {transform_indices = @transform_4, window_bounds = array<i64: 1, 128>}, {transform_indices = @transform_5, window_bounds = array<i64: 128, 128>}]} {
    %c0_i32 = arith.constant 0 : i32
    %0 = arith.cmpi eq, %arg1, %c0_i32 : i32
    %1 = arith.extui %0 : i1 to i32
    %c0_i32_0 = arith.constant 0 : i32
    %2 = arith.cmpi ne, %1, %c0_i32_0 : i32
    scf.if %2 {
      %c0_9 = arith.constant 0 : index
      %c0_10 = arith.constant 0 : index
      %12 = vector.load %arg2[%c0_9, %c0_10] : memref<128x48xf32, #tpu.memory_space<vmem>>, vector<128x48xf32>
      %c0_11 = arith.constant 0 : index
      %c0_12 = arith.constant 0 : index
      %13 = vector.load %arg3[%c0_11, %c0_12] : memref<48x128xf32, #tpu.memory_space<vmem>>, vector<48x128xf32>
      %cst_13 = arith.constant dense<0.000000e+00> : vector<128x128xf32>
      %14 = tpu.matmul %12, %13, %cst_13 {dimension_numbers = #tpu.dot_dimension_numbers<[1], [0], [0], [1], [0, 0, 1, 1], [], []>} : vector<128x48xf32>, vector<48x128xf32>, vector<128x128xf32> -> vector<128x128xf32>
      %c0_14 = arith.constant 0 : index
      %c0_15 = arith.constant 0 : index
      %15 = vector.load %arg4[%c0_14, %c0_15] : memref<1x128xf32, #tpu.memory_space<vmem>>, vector<1x128xf32>
      %16 = vector.broadcast %15 : vector<1x128xf32> to vector<128x128xf32>
      %17 = arith.addf %14, %16 : vector<128x128xf32>
      %cst_16 = arith.constant 0.000000e+00 : f32
      %18 = vector.broadcast %cst_16 : f32 to vector<128x128xf32>
      %19 = arith.maximumf %17, %18 : vector<128x128xf32>
      %c0_17 = arith.constant 0 : index
      %c0_18 = arith.constant 0 : index
      %20 = vector.load %arg8[%c0_17, %c0_18] : memref<128x128xf32, #tpu.memory_space<vmem>>, vector<128x128xf32>
      tpu.vector_store %arg8[%c0_17, %c0_18], %19 {strides = array<i32>} : memref<128x128xf32, #tpu.memory_space<vmem>>, vector<128x128xf32>,
    } else {
    }
    %c0 = arith.constant 0 : index
    %c0_1 = arith.constant 0 : index
    %3 = vector.load %arg8[%c0, %c0_1] : memref<128x128xf32, #tpu.memory_space<vmem>>, vector<128x128xf32>
    %c0_2 = arith.constant 0 : index
    %c0_3 = arith.constant 0 : index
    %4 = vector.load %arg5[%c0_2, %c0_3] : memref<128x128xf32, #tpu.memory_space<vmem>>, vector<128x128xf32>
    %cst = arith.constant dense<0.000000e+00> : vector<128x128xf32>
    %5 = tpu.matmul %3, %4, %cst {dimension_numbers = #tpu.dot_dimension_numbers<[1], [0], [0], [1], [0, 0, 1, 1], [], []>} : vector<128x128xf32>, vector<128x128xf32>, vector<128x128xf32> -> vector<128x128xf32>
    %c0_4 = arith.constant 0 : index
    %c0_5 = arith.constant 0 : index
    %6 = vector.load %arg6[%c0_4, %c0_5] : memref<1x128xf32, #tpu.memory_space<vmem>>, vector<1x128xf32>
    %7 = vector.broadcast %6 : vector<1x128xf32> to vector<128x128xf32>
    %8 = arith.addf %5, %7 : vector<128x128xf32>
    %cst_6 = arith.constant 0.000000e+00 : f32
    %9 = vector.broadcast %cst_6 : f32 to vector<128x128xf32>
    %10 = arith.maximumf %8, %9 : vector<128x128xf32>
    %c0_7 = arith.constant 0 : index
    %c0_8 = arith.constant 0 : index
    %11 = vector.load %arg7[%c0_7, %c0_8] : memref<128x128xf32, #tpu.memory_space<vmem>>, vector<128x128xf32>
    tpu.vector_store %arg7[%c0_7, %c0_8], %10 {strides = array<i32>} : memref<128x128xf32, #tpu.memory_space<vmem>>, vector<128x128xf32>,
    return
  }
  func.func @transform_0(%arg0: i32, %arg1: i32) -> (i32, i32) {
    %c0_i32 = arith.constant 0 : i32
    %c0_i32_0 = arith.constant 0 : i32
    return %arg0, %c0_i32 : i32, i32
  }
  func.func @transform_1(%arg0: i32, %arg1: i32) -> (i32, i32) {
    %c0_i32 = arith.constant 0 : i32
    %c0_i32_0 = arith.constant 0 : i32
    %c0_i32_1 = arith.constant 0 : i32
    return %c0_i32, %c0_i32_0 : i32, i32
  }
  func.func @transform_2(%arg0: i32, %arg1: i32) -> (i32, i32) {
    %c0_i32 = arith.constant 0 : i32
    %c0_i32_0 = arith.constant 0 : i32
    %c0_i32_1 = arith.constant 0 : i32
    return %c0_i32, %c0_i32_0 : i32, i32
  }
  func.func @transform_3(%arg0: i32, %arg1: i32) -> (i32, i32) {
    %c0_i32 = arith.constant 0 : i32
    %c0_i32_0 = arith.constant 0 : i32
    return %c0_i32, %arg1 : i32, i32
  }
  func.func @transform_4(%arg0: i32, %arg1: i32) -> (i32, i32) {
    %c0_i32 = arith.constant 0 : i32
    %c0_i32_0 = arith.constant 0 : i32
    return %c0_i32, %arg1 : i32, i32
  }
  func.func @transform_5(%arg0: i32, %arg1: i32) -> (i32, i32) {
    %c0_i32 = arith.constant 0 : i32
    return %arg0, %arg1 : i32, i32
  }
}

</mosaic_0001>

<bundles_post_ra>
// kernel: tpu_custom_call.1
= control target key start
LH: loop header
LB: loop body
LE: loop exit
PB: predicated region body
PF: predicated region fallthrough
CT: control target
= control target key end

     0   :  { %10 = vsyncpa [#allocation4], 0  ;;  %s1561_s0 = inlined_call_operand.vmem [shape: f32[300,48], index: 0, kind: input, shape index: {}]   ;;  %s1562_s1 = inlined_call_operand.vmem [shape: f32[48,128], index: 1, kind: input, shape index: {}]   ;;  %s1563_s2 = inlined_call_operand.vmem [shape: f32[1,128], index: 2, kind: input, shape index: {}]   ;;  %s1564_s3 = inlined_call_operand.vmem [shape: f32[128,128], index: 3, kind: input, shape index: {}]   ;;  %s1565_s4 = inlined_call_operand.vmem [shape: f32[1,128], index: 4, kind: input, shape index: {}]   ;;  %s1566_s5 = inlined_call_operand.hbm [shape: f32[300,128], index: 5, kind: output, shape index: {}]  }
   0x1   :  { %12 = vsyncpa [#allocation4 + $0x1], 0  ;;  %s1303_s18 = smov 0   ;;  %s1305_s19 = smov 0  }
   0x2   :  { %s1307_s20 = smov 0   ;;  %s1309_s21 = smov 0  }
   0x3   :  { %s1311_s22 = smov 0   ;;  %s1313_s23 = smov 0  }
   0x4 LB: > { %s890_s24 = sadd.s32 4294967295, %s1268_s23   ;;  %s891_s25 = sadd.s32 4294967294, %s1268_s23   ;;  %s1268_s23 = sphi %s1313_s23, %s18_s23   ;;  %s1264_s22 = sphi %s1311_s22, %s1573_s22   ;;  %s1260_s21 = sphi %s1309_s21, %s1572_s21   ;;  %s1256_s20 = sphi %s1307_s20, %s1571_s20   ;;  %s1252_s19 = sphi %s1305_s19, %s1570_s19   ;;  %s1248_s18 = sphi %s1303_s18, %s1569_s18  }
   0x5   : > { %s30_s26 = sadd.s32 1, %s1264_s22  ;;  %s159_s27 = sadd.s32 1, %s1256_s20 }
   0x6   : > { %p32_p0 = scmp.ge.s32.totalorder %s30_s26, 3  ;;  %p169_p1 = scmp.ne.s32.totalorder %s1256_s20, %s1252_s19 }
   0x7   : > { %p170_p2 = scmp.eq.s32.totalorder %s890_s24, 2  ;;  %p175_p3 = scmp.ne.s32.totalorder %s1252_s19, %s1248_s18 }
   0x8   : > { %s1575_s26 = smov (%p32_p0, %s30_s26), 0  ;;  %p176_p5 = scmp.eq.s32.totalorder %s891_s25, 2 }
   0x9   : > { %p1343_p4 = por %p170_p2, %p169_p1  ;;  %s154_s29 = ssub.s32 %s1264_s22, %s1575_s26 }
   0xa   : > { %p896_p6 = scmp.ge.s32.totalorder %s1268_s23, 1  ;;  %p157_p7 = scmp.eq.s32.totalorder %s154_s29, 0 }
   0xb   : > { %p1350_p8 = por %p176_p5, %p175_p3  ;;  %p230_p9 = scmp.lt.s32.totalorder %s1268_s23, 4 }
   0xc   : > { %s1356_s6 = scalar_select %p157_p7, %s1256_s20, %s159_s27  }
   0xd   : > { %p231_p10 = pnand %p896_p6, %p230_p9 }
   0xe   : > { %v315_v0 = vld [vmem:[%s1562_s1] sm:$0xff] (!%p231_p10)  ;;  %v316_v1 = vld [vmem:[%s1562_s1 + $0x8] sm:$0xff] (!%p231_p10)  ;;  %v317_v2 = vld [vmem:[%s1562_s1 + $0x10] sm:$0xff] (!%p231_p10)  ;;  %s1368_s13 = sshll.u32 (!%p231_p10), %s1260_s21, 4  ;;  %vm328_vm0 = vcmask (!%p231_p10), 392192  }
   0xf   : > { %234 = sbr.rel (%p231_p10) target bundleno = 521 (0x209), region = 40  ;;  %v1074_v3 = vpack.c.bf16 (!%p231_p10), %v316_v1, %v315_v0  ;;  %v318_v4 = vld [vmem:[%s1562_s1 + $0x18] sm:$0xff] (!%p231_p10)  ;;  %v319_v5 = vld [vmem:[%s1562_s1 + $0x20] sm:$0xff] (!%p231_p10)  ;;  %v320_v6 = vld [vmem:[%s1562_s1 + $0x28] sm:$0xff] (!%p231_p10)  ;;  %p274_p11 = scmp.lt.s32.totalorder (!%p231_p10), %s1368_s13, 37 }
  0x10   : > { %v1078_v7 = vpack.c.bf16 (!%p231_p10), %v318_v4, %v317_v2  ;;  %v570_v8 = vld [vmem:[%s1564_s3] sm:$0xff] (!%p231_p10)  ;;  %v571_v9 = vld [vmem:[%s1564_s3 + $0x8] sm:$0xff] (!%p231_p10)  ;;  %v572_v10 = vld [vmem:[%s1564_s3 + $0x10] sm:$0xff] (!%p231_p10)  ;;  %v1082_v13 = vpack.c.bf16 (!%p231_p10), %v320_v6, %v319_v5 }
  0x11   : > { %1075 = vmatprep.subr.bf16.mxu0 (!%p231_p10), %v1074_v3  ;;  %v1086_v11 = vpack.c.bf16 (!%p231_p10), %v571_v9, %v570_v8  ;;  %v573_v12 = vld [vmem:[%s1564_s3 + $0x18] sm:$0xff] (!%p231_p10)  ;;  %v574_v15 = vld [vmem:[%s1564_s3 + $0x20] sm:$0xff] (!%p231_p10)  ;;  %v575_v16 = vld [vmem:[%s1564_s3 + $0x28] sm:$0xff] (!%p231_p10) }
  0x12   : > { %1077 = vmatpush3.bf16.msra.mxu0 (!%p231_p10), %v1074_v3  ;;  %v1090_v14 = vpack.c.bf16 (!%p231_p10), %v573_v12, %v572_v10  ;;  %v1094_v18 = vpack.c.bf16 (!%p231_p10), %v575_v16, %v574_v15  ;;  %v576_v19 = vld [vmem:[%s1564_s3 + $0x30] sm:$0xff] (!%p231_p10)  ;;  %v577_v20 = vld [vmem:[%s1564_s3 + $0x38] sm:$0xff] (!%p231_p10)  ;;  %v578_v24 = vld [vmem:[%s1564_s3 + $0x40] sm:$0xff] (!%p231_p10) }
  0x13   : > { %1079 = vmatprep.subr.bf16.mxu0 (!%p231_p10), %v1078_v7  ;;  %1118 = vmatprep.subr.bf16.mxu1 (!%p231_p10), %v1086_v11  ;;  %v1098_v23 = vpack.c.bf16 (!%p231_p10), %v577_v20, %v576_v19  ;;  %v579_v25 = vld [vmem:[%s1564_s3 + $0x48] sm:$0xff] (!%p231_p10)  ;;  %v580_v29 = vld [vmem:[%s1564_s3 + $0x50] sm:$0xff] (!%p231_p10)  ;;  %v581_v30 = vld [vmem:[%s1564_s3 + $0x58] sm:$0xff] (!%p231_p10) }
  0x14   : > { %1126 = vmatpush3.bf16.msra.mxu1 (!%p231_p10), %v1086_v11  ;;  %v1102_v28 = vpack.c.bf16 (!%p231_p10), %v579_v25, %v578_v24  ;;  %v1106_v33 = vpack.c.bf16 (!%p231_p10), %v581_v30, %v580_v29  ;;  %v582_v34 = vld [vmem:[%s1564_s3 + $0x60] sm:$0xff] (!%p231_p10)  ;;  %v583_v35 = vld [vmem:[%s1564_s3 + $0x68] sm:$0xff] (!%p231_p10)  ;;  %v584_v46 = vld [vmem:[%s1564_s3 + $0x70] sm:$0xff] (!%p231_p10) }
  0x15   : > { %1119 = vmatprep.subr.bf16.mxu1 (!%p231_p10), %v1090_v14  ;;  %v1110_v38 = vpack.c.bf16 (!%p231_p10), %v583_v35, %v582_v34  ;;  %v585_v47 = vld [vmem:[%s1564_s3 + $0x78] sm:$0xff] (!%p231_p10)  ;;  %v900_v49 = vld [vmem:[%s1563_s2] ss:$0 sm:$0xff] (!%p231_p10) }
  0x16   : > { %s275_s11 = scalar_select %p274_p11, %s1368_s13, 37  ;;  %1081 = vmatpush3.bf16.msra.mxu0 %v1078_v7  ;;  %v1114_v48 = vpack.c.bf16 %v585_v47, %v584_v46  ;;  %v917_v34 = vld [vmem:[%s1565_s4] ss:$0 sm:$0xff] }
  0x17   : > { %1083 = vmatprep.subr.bf16.mxu0 %v1082_v13  ;;  %s779_s9 = ssub.s32 (%p1343_p4), 38, %s1368_s13 }
  0x18   : > { %s899_s15 = sshll.u32 %s275_s11, 3  ;;  %1127 = vmatpush3.bf16.msra.mxu1 %v1090_v14  ;;  %p780_p12 = scmp.lt.s32.totalorder (%p1343_p4), %s779_s9, 16 }
  0x19   : > { %s1396_s24 = scalar_lea.vmem %s1561_s0, %s899_s15  ;;  %1120 = vmatprep.subr.bf16.mxu1 %v1094_v18 }
  0x1a   : > { %v299_v17 = vld [vmem:[%s1396_s24] sm:$0xff]  ;;  %1085 = vmatpush3.bf16.msra.mxu0 %v1082_v13  ;;  %v300_v21 = vld [vmem:[%s1396_s24 + $0x8] sm:$0xff]  ;;  %v301_v22 = vld [vmem:[%s1396_s24 + $0x10] sm:$0xff] }
  0x1b   : > { %994 = vmatprep.mubr.msk.f32.mxu0 %vm328_vm0, %v299_v17  ;;  %1087 = vmatprep.subr.bf16.mxu0 %v1086_v11  ;;  %v302_v26 = vld [vmem:[%s1396_s24 + $0x18] sm:$0xff]  ;;  %v303_v27 = vld [vmem:[%s1396_s24 + $0x20] sm:$0xff]  ;;  %v304_v31 = vld [vmem:[%s1396_s24 + $0x28] sm:$0xff] }
  0x1c   : > { %1128 = vmatpush3.bf16.msra.mxu1 %v1094_v18  ;;  %v305_v32 = vld [vmem:[%s1396_s24 + $0x30] sm:$0xff]  ;;  %v306_v36 = vld [vmem:[%s1396_s24 + $0x38] sm:$0xff]  ;;  %v307_v37 = vld [vmem:[%s1396_s24 + $0x40] sm:$0xff] }
  0x1d   : > { %995 = vmatmul.mubr.msk.f32.vlgmr.msra.gmra.mrb[0].mxu0 %vm328_vm0, %v300_v21  ;;  %1121 = vmatprep.subr.bf16.mxu1 %v1098_v23  ;;  %v308_v39 = vld [vmem:[%s1396_s24 + $0x48] sm:$0xff]  ;;  %v309_v40 = vld [vmem:[%s1396_s24 + $0x50] sm:$0xff]  ;;  %v310_v41 = vld [vmem:[%s1396_s24 + $0x58] sm:$0xff] }
  0x1e   : > { %997 = vmatprep.mubr.msk.f32.mxu0 %vm328_vm0, %v301_v22  ;;  %1089 = vmatpush3.bf16.msra.mxu0 %v1086_v11  ;;  %v311_v42 = vld [vmem:[%s1396_s24 + $0x60] sm:$0xff]  ;;  %v312_v43 = vld [vmem:[%s1396_s24 + $0x68] sm:$0xff]  ;;  %v313_v44 = vld [vmem:[%s1396_s24 + $0x70] sm:$0xff] }
  0x1f   : > { %1091 = vmatprep.subr.bf16.mxu0 %v1090_v14  ;;  %v314_v45 = vld [vmem:[%s1396_s24 + $0x78] sm:$0xff]  ;;  %s266_s24 = sand.u32 1, %s1252_s19  }
  0x20   : > { %1129 = vmatpush3.bf16.msra.mxu1 %v1098_v23  ;;  %s897_s29 = sshll.u32 %s266_s24, 7  ;;  %s1495_s8 = scalar_lea.sflag [#allocation4], %s266_s24 }
  0x21   : > { %998 = vmatmul.mubr.msk.f32.gmra.mrb[2].mxu0 %vm328_vm0, %v302_v26  ;;  %1122 = vmatprep.subr.bf16.mxu1 %v1102_v28  ;;  %s1475_s7 = scalar_lea.vmem [#allocation3], %s897_s29 }
  0x22   : > { %1000 = vmatprep.mubr.msk.f32.mxu0 %vm328_vm0, %v303_v27  ;;  %1093 = vmatpush3.bf16.msra.mxu0 %v1090_v14 }
  0x23   : > { %1095 = vmatprep.subr.bf16.mxu0 %v1094_v18 }
  0x24   : > { %1130 = vmatpush3.bf16.msra.mxu1 %v1102_v28 }
  0x25   : > { %1001 = vmatmul.mubr.msk.f32.gmra.mrb[4].mxu0 %vm328_vm0, %v304_v31  ;;  %1123 = vmatprep.subr.bf16.mxu1 %v1106_v33 }
  0x26   : > { %1003 = vmatprep.mubr.msk.f32.mxu0 %vm328_vm0, %v305_v32  ;;  %1097 = vmatpush3.bf16.msra.mxu0 %v1094_v18 }
  0x27   : > { %1099 = vmatprep.subr.bf16.mxu0 %v1098_v23 }
  0x28   : > { %1131 = vmatpush3.bf16.msra.mxu1 %v1106_v33 }
  0x29   : > { %1004 = vmatmul.mubr.msk.f32.gmra.mrb[6].mxu0 %vm328_vm0, %v306_v36  ;;  %1124 = vmatprep.subr.bf16.mxu1 %v1110_v38 }
  0x2a   : > { %1006 = vmatprep.mubr.msk.f32.mxu0 %vm328_vm0, %v307_v37  ;;  %1101 = vmatpush3.bf16.msra.mxu0 %v1098_v23 }
  0x2b   : > { %1103 = vmatprep.subr.bf16.mxu0 %v1102_v28 }
  0x2c   : > { %1132 = vmatpush3.bf16.msra.mxu1 %v1110_v38 }
  0x2d   : > { %1007 = vmatmul.mubr.msk.f32.gmra.mrb[8].mxu0 %vm328_vm0, %v308_v39  ;;  %1125 = vmatprep.subr.bf16.mxu1 %v1114_v48 }
  0x2e   : > { %1009 = vmatprep.mubr.msk.f32.mxu0 %vm328_vm0, %v309_v40  ;;  %1105 = vmatpush3.bf16.msra.mxu0 %v1102_v28 }
  0x2f   : > { %1107 = vmatprep.subr.bf16.mxu0 %v1106_v33 }
  0x30   : > { %1133 = vmatpush3.bf16.msra.mxu1 %v1114_v48 }
  0x31   : > { %1010 = vmatmul.mubr.msk.f32.gmra.mrb[10].mxu0 %vm328_vm0, %v310_v41 }
  0x32   : > { %1012 = vmatprep.mubr.msk.f32.mxu0 %vm328_vm0, %v311_v42  ;;  %1109 = vmatpush3.bf16.msra.mxu0 %v1106_v33 }
  0x33   : > { %1111 = vmatprep.subr.bf16.mxu0 %v1110_v38 }
  0x35   : > { %1013 = vmatmul.mubr.msk.f32.gmra.mrb[12].mxu0 %vm328_vm0, %v312_v43 }
  0x36   : > { %1015 = vmatprep.mubr.msk.f32.mxu0 %vm328_vm0, %v313_v44  ;;  %1113 = vmatpush3.bf16.msra.mxu0 %v1110_v38 }
  0x37   : > { %1115 = vmatprep.subr.bf16.mxu0 %v1114_v48 }
  0x39   : > { %1016 = vmatmul.mubr.msk.f32.gmra.mrb[14].mxu0 %vm328_vm0, %v314_v45 }
  0x3a   : > { %1117 = vmatpush3.bf16.msra.mxu0 %v1114_v48 }
  0xf0   : > { %v996_v50 = vpop.f32.mrb[0].mxu0 }
  0xf1   : > { %v449_v51 = vadd.f32 %v996_v50, %v900_v49  ;;  %v443_v52 = vpop.f32.mrb[1].mxu0 }
  0xf2   : > { %v444_v53 = vadd.f32 %v900_v49, %v443_v52 }
  0xf3   : > { %v523_v56 = vmax.f32 %v449_v51, 0.0 }
  0xf4   : > { %v522_v54 = vmax.f32 %v444_v53, 0.0  ;;  %v999_v55 = vpop.f32.mrb[2].mxu0 }
  0xf5   : > { %v459_v57 = vadd.f32 %v999_v55, %v900_v49  ;;  %v453_v58 = vpop.f32.mrb[3].mxu0 }
  0xf6   : > { %v454_v59 = vadd.f32 %v900_v49, %v453_v58  ;;  %1050 = vmatprep.mubr.f32.mxu0 %v522_v54 }
  0xf7   : > { %1051 = vmatmul.mubr.f32.vlgmr.msra.gmra.mrb[16].mxu0 %v523_v56  ;;  %v525_v62 = vmax.f32 %v459_v57, 0.0 }
  0xf8   : > { %v524_v60 = vmax.f32 %v454_v59, 0.0  ;;  %v1002_v61 = vpop.f32.mrb[4].mxu0 }
  0xf9   : > { %v469_v63 = vadd.f32 %v1002_v61, %v900_v49  ;;  %v463_v0 = vpop.f32.mrb[5].mxu0 }
  0xfa   : > { %1053 = vmatprep.mubr.f32.mxu0 %v524_v60  ;;  %v464_v1 = vadd.f32 %v900_v49, %v463_v0 }
  0xfb   : > { %1054 = vmatmul.mubr.f32.gmra.mrb[18].mxu0 %v525_v62  ;;  %v527_v4 = vmax.f32 %v469_v63, 0.0 }
  0xfc   : > { %v1005_v2 = vpop.f32.mrb[6].mxu0  ;;  %v526_v3 = vmax.f32 %v464_v1, 0.0 }
  0xfd   : > { %v479_v5 = vadd.f32 %v1005_v2, %v900_v49  ;;  %v473_v6 = vpop.f32.mrb[7].mxu0 }
  0xfe   : > { %v474_v7 = vadd.f32 %v900_v49, %v473_v6  ;;  %1056 = vmatprep.mubr.f32.mxu1 %v526_v3 }
  0xff   : > { %1057 = vmatmul.mubr.f32.vlgmr.msra.gmra.mrb[0].mxu1 %v527_v4  ;;  %v529_v10 = vmax.f32 %v479_v5, 0.0 }
 0x100   : > { %v528_v8 = vmax.f32 %v474_v7, 0.0  ;;  %v1008_v9 = vpop.f32.mrb[8].mxu0 }
 0x101   : > { %v489_v11 = vadd.f32 %v1008_v9, %v900_v49  ;;  %v483_v12 = vpop.f32.mrb[9].mxu0 }
 0x102   : > { %v484_v13 = vadd.f32 %v900_v49, %v483_v12  ;;  %1059 = vmatprep.mubr.f32.mxu1 %v528_v8 }
 0x103   : > { %1060 = vmatmul.mubr.f32.gmra.mrb[2].mxu1 %v529_v10  ;;  %v531_v16 = vmax.f32 %v489_v11, 0.0 }
 0x104   : > { %v530_v14 = vmax.f32 %v484_v13, 0.0  ;;  %v1011_v15 = vpop.f32.mrb[10].mxu0 }
 0x105   : > { %v499_v17 = vadd.f32 %v1011_v15, %v900_v49  ;;  %v493_v18 = vpop.f32.mrb[11].mxu0 }
 0x106   : > { %v494_v19 = vadd.f32 %v900_v49, %v493_v18  ;;  %1062 = vmatprep.mubr.f32.mxu1 %v530_v14 }
 0x107   : > { %1063 = vmatmul.mubr.f32.gmra.mrb[4].mxu1 %v531_v16  ;;  %v533_v22 = vmax.f32 %v499_v17, 0.0 }
 0x108   : > { %v532_v20 = vmax.f32 %v494_v19, 0.0  ;;  %v1014_v21 = vpop.f32.mrb[12].mxu0 }
 0x109   : > { %v509_v23 = vadd.f32 %v1014_v21, %v900_v49  ;;  %v503_v24 = vpop.f32.mrb[13].mxu0 }
 0x10a   : > { %v504_v25 = vadd.f32 %v900_v49, %v503_v24  ;;  %1065 = vmatprep.mubr.f32.mxu1 %v532_v20 }
 0x10b   : > { %1066 = vmatmul.mubr.f32.gmra.mrb[6].mxu1 %v533_v22  ;;  %v535_v28 = vmax.f32 %v509_v23, 0.0 }
 0x10c   : > { %v534_v26 = vmax.f32 %v504_v25, 0.0  ;;  %v1017_v27 = vpop.f32.mrb[14].mxu0 }
 0x10d   : > { %v519_v29 = vadd.f32 %v1017_v27, %v900_v49  ;;  %v513_v30 = vpop.f32.mrb[15].mxu0 }
 0x10e   : > { %v514_v31 = vadd.f32 %v900_v49, %v513_v30  ;;  %1068 = vmatprep.mubr.f32.mxu1 %v534_v26 }
 0x10f   : > { %1069 = vmatmul.mubr.f32.gmra.mrb[8].mxu1 %v535_v28  ;;  %v537_v33 = vmax.f32 %v519_v29, 0.0 }
 0x110   : > { %v536_v32 = vmax.f32 %v514_v31, 0.0 }
 0x112   : > { %1071 = vmatprep.mubr.f32.mxu1 %v536_v32 }
 0x113   : > { %1072 = vmatmul.mubr.f32.gmra.mrb[10].mxu1 %v537_v33 }
 0x1ca   : > { %v1052_v35 = vpop.f32.mrb[16].mxu0 }
 0x1cb   : > { %v665_v36 = vadd.f32 %v1052_v35, %v917_v34  ;;  %v659_v37 = vpop.f32.mrb[17].mxu0 }
 0x1cc   : > { %v660_v38 = vadd.f32 %v917_v34, %v659_v37 }
 0x1cd   : > { %v739_v39 = vmax.f32 %v665_v36, 0.0 }
 0x1ce   : > { %v738_v40 = vmax.f32 %v660_v38, 0.0  ;;  %v1055_v41 = vpop.f32.mrb[18].mxu0 }
 0x1cf   : > { %755 = vst [vmem:[%s1475_s7 + $0x8] sm:$0xff] %v739_v39  ;;  %v675_v42 = vadd.f32 %v1055_v41, %v917_v34  ;;  %v669_v43 = vpop.f32.mrb[19].mxu0 }
 0x1d0   : > { %754 = vst [vmem:[%s1475_s7] sm:$0xff] %v738_v40  ;;  %v670_v44 = vadd.f32 %v917_v34, %v669_v43 }
 0x1d1   : > { %v741_v45 = vmax.f32 %v675_v42, 0.0 }
 0x1d2   : > { %v740_v46 = vmax.f32 %v670_v44, 0.0  ;;  %v1058_v47 = vpop.f32.mrb[0].mxu1 }
 0x1d3   : > { %757 = vst [vmem:[%s1475_s7 + $0x18] sm:$0xff] %v741_v45  ;;  %v685_v48 = vadd.f32 %v1058_v47, %v917_v34  ;;  %v679_v49 = vpop.f32.mrb[1].mxu1 }
 0x1d4   : > { %756 = vst [vmem:[%s1475_s7 + $0x10] sm:$0xff] %v740_v46  ;;  %v680_v50 = vadd.f32 %v917_v34, %v679_v49 }
 0x1d5   : > { %v743_v51 = vmax.f32 %v685_v48, 0.0 }
 0x1d6   : > { %v742_v52 = vmax.f32 %v680_v50, 0.0  ;;  %v1061_v53 = vpop.f32.mrb[2].mxu1 }
 0x1d7   : > { %759 = vst [vmem:[%s1475_s7 + $0x28] sm:$0xff] %v743_v51  ;;  %v695_v54 = vadd.f32 %v1061_v53, %v917_v34  ;;  %v689_v55 = vpop.f32.mrb[3].mxu1 }
 0x1d8   : > { %758 = vst [vmem:[%s1475_s7 + $0x20] sm:$0xff] %v742_v52  ;;  %v690_v56 = vadd.f32 %v917_v34, %v689_v55 }
 0x1d9   : > { %v745_v57 = vmax.f32 %v695_v54, 0.0 }
 0x1da   : > { %v744_v58 = vmax.f32 %v690_v56, 0.0  ;;  %v1064_v59 = vpop.f32.mrb[4].mxu1 }
 0x1db   : > { %761 = vst [vmem:[%s1475_s7 + $0x38] sm:$0xff] %v745_v57  ;;  %v705_v60 = vadd.f32 %v1064_v59, %v917_v34  ;;  %v699_v61 = vpop.f32.mrb[5].mxu1 }
 0x1dc   : > { %760 = vst [vmem:[%s1475_s7 + $0x30] sm:$0xff] %v744_v58  ;;  %v700_v62 = vadd.f32 %v917_v34, %v699_v61 }
 0x1dd   : > { %v747_v63 = vmax.f32 %v705_v60, 0.0 }
 0x1de   : > { %v746_v0 = vmax.f32 %v700_v62, 0.0  ;;  %v1067_v1 = vpop.f32.mrb[6].mxu1 }
 0x1df   : > { %763 = vst [vmem:[%s1475_s7 + $0x48] sm:$0xff] %v747_v63  ;;  %v715_v2 = vadd.f32 %v1067_v1, %v917_v34  ;;  %v709_v3 = vpop.f32.mrb[7].mxu1 }
 0x1e0   : > { %762 = vst [vmem:[%s1475_s7 + $0x40] sm:$0xff] %v746_v0  ;;  %v710_v4 = vadd.f32 %v917_v34, %v709_v3 }
 0x1e1   : > { %v749_v5 = vmax.f32 %v715_v2, 0.0 }
 0x1e2   : > { %v748_v6 = vmax.f32 %v710_v4, 0.0  ;;  %v1070_v7 = vpop.f32.mrb[8].mxu1 }
 0x1e3   : > { %765 = vst [vmem:[%s1475_s7 + $0x58] sm:$0xff] %v749_v5  ;;  %v725_v8 = vadd.f32 %v1070_v7, %v917_v34  ;;  %v719_v9 = vpop.f32.mrb[9].mxu1 }
 0x1e4   : > { %764 = vst [vmem:[%s1475_s7 + $0x50] sm:$0xff] %v748_v6  ;;  %v720_v10 = vadd.f32 %v917_v34, %v719_v9 }
 0x1e5   : > { %v751_v11 = vmax.f32 %v725_v8, 0.0 }
 0x1e6   : > { %v750_v12 = vmax.f32 %v720_v10, 0.0  ;;  %v1073_v13 = vpop.f32.mrb[10].mxu1  ;;  %777 = sbr.rel (!%p1343_p4) target bundleno = 521 (0x209), region = 48 }
 0x1e7   : > { %767 = vst [vmem:[%s1475_s7 + $0x68] sm:$0xff] %v751_v11  ;;  %v735_v14 = vadd.f32 %v1073_v13, %v917_v34  ;;  %v729_v15 = vpop.f32.mrb[11].mxu1 }
 0x1e8   : > { %766 = vst [vmem:[%s1475_s7 + $0x60] sm:$0xff] %v750_v12  ;;  %v730_v16 = vadd.f32 %v917_v34, %v729_v15 }
 0x1e9   : > { %v753_v17 = vmax.f32 %v735_v14, 0.0 }
 0x1ea   : > { %v752_v18 = vmax.f32 %v730_v16, 0.0 }
 0x1eb   : > { %769 = vst [vmem:[%s1475_s7 + $0x78] sm:$0xff] %v753_v17 }
 0x1ec   : > { %768 = vst [vmem:[%s1475_s7 + $0x70] sm:$0xff] %v752_v18 }
 0x1ed   : > { %s1577_s9 = smov (!%p780_p12, %s779_s9), 16 }
 0x1ee   : > { %s1500_s10 = sshll.u32 %s1577_s9, 7 }
 0x1ef   : > { %s784_s11 = ssub.s32 2048, %s1500_s10 }
 0x1f0   : > { %785 = vsyncadd %s1495_s8, %s784_s11  ;;  %p921_p13 = scmp.ne.s32.totalorder %s1500_s10, 0  ;;  %s927_s12 = sshll.u32 %s1260_s21, 11 }
 0x1f1   : > { %s1509_s15 = scalar_lea.hbm %s1566_s5, %s927_s12  ;;  %s791_s13 = sshll.u32 %s1475_s7, 4  ;;  %s1512_s13 = int_to_ptr.vmem [resolvable:$true] %s791_s13 }
 0x1f2   : > { %s1190_s16 = scalar_lea.vmem %s1512_s13, %s1500_s10  ;;  %s1270_s17 = smov [#allocation3]  }
 0x1f3   : > { %p1191_p0 = scmp.ne.s32.totalorder %s1512_s13, %s1190_s16  ;;  %s1194_s24 = sshll.u32 %s1270_s17, 4  ;;  %s1195_s24 = int_to_ptr.vmem [resolvable:$false] %s1194_s24 }
 0x1f4   : > { %s1196_s21 = scalar_lea.vmem %s1195_s24, 4096  ;;  %p1197_p3 = scmp.lt.s32.totalorder %s1512_s13, %s1195_s24 }
 0x1f5   : > { %p1192_p1 = pnand %p1191_p0, %p921_p13  ;;  %p1198_p4 = scmp.lt.s32.totalorder %s1196_s21, %s1190_s16 }
 0x1f7   : > { %p1193_p2 = pneg %p1192_p1  ;;  %p1199_p5 = por %p1198_p4, %p1197_p3 }
 0x1f9   : > { %p1200_p6 = pnand %p1199_p5, %p1193_p2 }
 0x1fb   : > { %1203 = shalt.err (!%p1200_p6)
}
 0x1fc   : > { %s1204_s25 = scalar_lea.hbm %s1509_s15, %s1500_s10  ;;  %s1208_s7 = scalar_lea.hbm %s1566_s5, 4864 }
 0x1fd   : > { %p1205_p7 = scmp.ne.s32.totalorder %s1509_s15, %s1204_s25  ;;  %p1209_p11 = scmp.lt.u32.totalorder %s1509_s15, %s1566_s5 }
 0x1fe   : > { %p1210_p12 = scmp.lt.u32.totalorder %s1208_s7, %s1204_s25  ;;  %p1212_p1 = scmp.lt.u32.totalorder %s1204_s25, %s1509_s15 }
 0x1ff   : > { %p1206_p9 = pnand %p1205_p7, %p921_p13 }
 0x200   : > { %p1211_p0 = por %p1210_p12, %p1209_p11 }
 0x201   : > { %p1207_p10 = pneg %p1206_p9 }
 0x202   : > { %p1213_p2 = por %p1212_p1, %p1211_p0 }
 0x204   : > { %p1214_p3 = pnand %p1213_p2, %p1207_p10 }
 0x206   : > { %1217 = shalt.err (!%p1214_p3)
}
 0x207   : > { %s1271_s12 = smov 128   ;;  %s1272_s14 = smov 8  }
 0x208   : > { %797 = dma.vmem_to_hbm [thread:$0]  (%p921_p13), %s1512_s13, %s1500_s10, %s1509_s15, %s1495_s8, %s1271_s12, %s1271_s12, %s1272_s14  }
 0x209 PF: > { %p1139_p4 = scmp.ge.s32.totalorder %s1268_s23, 2  ;;  %s806_s28 = sand.u32 1, %s1248_s18  }
 0x20a   : > { %s807_s16 = scalar_lea.sflag [#allocation4], %s806_s28 }
 0x20b   : > { %p1136_p5 = pnand %p1139_p4, %p1350_p8 }
 0x20d   : > { %1243 = dma.done.wait (!%p1136_p5), %s807_s16, 2048  }
 0x20e   : > { %1245 = vsyncadd (!%p1136_p5), %s807_s16, 4294965248  ;;  %s18_s23 = sadd.s32 1, %s1268_s23   ;;  %s1569_s18 = smov %s1252_s19 }
 0x20f   : > { %p15_p6 = scmp.ge.s32.totalorder %s18_s23, 5   ;;  %s1570_s19 = smov %s1256_s20 }
 0x210   : > { %s1571_s20 = smov %s1356_s6  ;;  %s1572_s21 = smov %s1264_s22 }
 0x211   : > { %s1573_s22 = smov %s1575_s26  ;;  %17 = sbr.rel (!%p15_p6) target bundleno = 4 (0x4), region = 85 }
 0x218   :  { %812 = vsyncpa [#allocation4], 1 }
 0x219   :  { %814 = vsyncpa [#allocation4 + $0x1], 1 }

</bundles_post_ra>
